<compile_context>
chip_gen: v7x
topology: tpu7x:2x2x1
jax: 0.10.0
libtpu: 0.0.40
codegen_flags: <defaults>
</compile_context>

<pallas_src>
import jax
import jax.numpy as jnp
from jax import lax
from jax.experimental import pallas as pl
from jax.experimental.pallas import tpu as pltpu


def _round_up(x, m):
    return ((x + m - 1) // m) * m


def _classifier_kernel(x_ref, wp_ref, bp_ref, wc_ref, bc_ref, o_ref, acc_ref):
    # x_ref:  [B, tk]      bf16 CLS-token K-slice            (streamed)
    # wp_ref: [H, tk]      bf16 pooler weight K-slice         (streamed, [out, in])
    # bp_ref: [1, H]       f32 pooler bias                    (resident)
    # wc_ref: [Lp, H]      bf16 classifier weight, lane-padded [out, in] (resident)
    # bc_ref: [1, Lp]      f32 classifier bias, lane-padded   (resident)
    # o_ref:  [B, Lp]      f32 logits (same block across k -> resident)
    # acc_ref:[B, H]       f32 VMEM scratch accumulator for the pooler matmul
    k = pl.program_id(0)

    @pl.when(k == 0)
    def _init():
        acc_ref[...] = jnp.zeros_like(acc_ref)

    # Partial pooler matmul on the MXU: x @ Wp^T (contract this K slice).
    acc_ref[...] += lax.dot_general(
        x_ref[...], wp_ref[...],
        dimension_numbers=(((1,), (1,)), ((), ())),
        preferred_element_type=jnp.float32,
    )

    @pl.when(k == pl.num_programs(0) - 1)
    def _finalize():
        # Bias + tanh in f32 (EUP handles tanh; it is off the VALU path).
        pooled = jnp.tanh(acc_ref[...] + bp_ref[...])
        # Dropout: identity in eval mode.
        # Classifier head: pooled @ Wc^T + bc, lane-dense [B, Lp] store.
        logits = lax.dot_general(
            pooled.astype(jnp.bfloat16), wc_ref[...],
            dimension_numbers=(((1,), (1,)), ((), ())),
            preferred_element_type=jnp.float32,
        ) + bc_ref[...]
        o_ref[...] = logits.astype(o_ref.dtype)


def classifier_forward(last_hidden_state, wp, bp, wc, bc, *, tk=None):
    """last_hidden_state: [B, S, H] float32
       wp: [H, H]  (PyTorch Linear weight, out x in),  bp: [H]
       wc: [L, H]  (PyTorch Linear weight, out x in),  bc: [L]
       returns logits: [B, L] float32
    """
    B, S, H = last_hidden_state.shape
    L = wc.shape[0]
    L_pad = _round_up(L, 128)  # lane-dense output / classifier weight rows

    # K-tile for the pooler contraction.
    #  * Single pass (tk = H) whenever the double-buffered bf16 Wp comfortably
    #    fits VMEM (covers BERT-base/large, H <= ~1.7K): one grid step, no
    #    per-step overhead, no accumulator traffic.
    #  * Otherwise the largest lane-aligned tile dividing H; fall back to a
    #    single full-H step for odd hidden sizes.
    if tk is None:
        if 2 * (H * H * 2) <= 12 * 1024 * 1024:
            tk = H
        else:
            tk = H
            for cand in (1024, 512, 256, 128):
                if H % cand == 0:
                    tk = cand
                    break
    num_k = max(1, H // tk)

    # Glue (tiny, fused by XLA): CLS slice + bf16 cast of the activations.
    # Weights stay in [out, in] layout (no transpose); bf16 for bandwidth.
    # (In a real serving path the weights would be stored bf16 once; astype is
    #  a no-op if they already are.)
    x_cls = last_hidden_state[:, 0, :].astype(jnp.bfloat16)              # [B, H]
    wp_bf = wp.astype(jnp.bfloat16)                                      # [H, H]
    wc_bf = jnp.pad(wc.astype(jnp.bfloat16), ((0, L_pad - L), (0, 0)))   # [Lp, H]
    bp2 = bp.astype(jnp.float32).reshape(1, H)
    bc2 = jnp.pad(bc.astype(jnp.float32), (0, L_pad - L)).reshape(1, L_pad)

    flops = 2 * B * H * H + 2 * B * H * L_pad
    bytes_accessed = (
        B * H * 2                 # CLS activations (bf16)
        + H * H * 2               # pooler weight (bf16)
        + L_pad * H * 2           # classifier weight (bf16)
        + H * 4 + L_pad * 4       # biases (f32)
        + B * L_pad * 4           # logits (f32)
    )

    out = pl.pallas_call(
        _classifier_kernel,
        out_shape=jax.ShapeDtypeStruct((B, L_pad), jnp.float32),
        grid=(num_k,),
        in_specs=[
            pl.BlockSpec((B, tk), lambda k: (0, k)),        # x K-slices (streamed)
            pl.BlockSpec((H, tk), lambda k: (0, k)),        # Wp K-slices (streamed, double-buffered)
            pl.BlockSpec((1, H), lambda k: (0, 0)),         # bp (resident)
            pl.BlockSpec((L_pad, H), lambda k: (0, 0)),     # Wc (resident)
            pl.BlockSpec((1, L_pad), lambda k: (0, 0)),     # bc (resident)
        ],
        out_specs=pl.BlockSpec((B, L_pad), lambda k: (0, 0)),
        scratch_shapes=[pltpu.VMEM((B, H), jnp.float32)],
        compiler_params=pltpu.CompilerParams(
            dimension_semantics=("arbitrary",),             # K is a reduction axis
            vmem_limit_bytes=32 * 1024 * 1024,
        ),
        cost_estimate=pl.CostEstimate(
            flops=flops,
            transcendentals=B * H,
            bytes_accessed=bytes_accessed,
        ),
    )(x_cls, wp_bf, bp2, wc_bf, bc2)

    return out[:, :L]


def _reference(last_hidden_state, wp, bp, wc, bc):
    x_cls = last_hidden_state[:, 0, :]
    pooled = jnp.tanh(x_cls @ wp.T + bp)
    return pooled @ wc.T + bc


if __name__ == "__main__":
    # Small shapes consistent with the module's forward:
    B, S, H, L = 2, 8, 32, 4  # batch, seq, hidden, num_labels
    key = jax.random.PRNGKey(0)
    k_x, k_wp, k_bp, k_wc, k_bc = jax.random.split(key, 5)

    last_hidden_state = jax.random.normal(k_x, (B, S, H), dtype=jnp.float32)
    # Deterministic synthetic parameters (pooler dense H->H, classifier H->L).
    wp = jax.random.normal(k_wp, (H, H), dtype=jnp.float32) * 0.05
    bp = jax.random.normal(k_bp, (H,), dtype=jnp.float32) * 0.05
    wc = jax.random.normal(k_wc, (L, H), dtype=jnp.float32) * 0.05
    bc = jax.random.normal(k_bc, (L,), dtype=jnp.float32) * 0.05

    # TODO(synk): dropout is modeled as eval-mode identity (no RNG mask), matching
    # the reference inference semantics.
    logits = classifier_forward(last_hidden_state, wp, bp, wc, bc)
    jax.block_until_ready(logits)

    ref = _reference(last_hidden_state, wp, bp, wc, bc)
    assert logits.shape == (B, L)
    # bf16 MXU operands -> looser tolerance than pure f32.
    assert jnp.allclose(logits, ref, atol=2e-2, rtol=2e-2), "mismatch vs reference"

    print("KERNEL_OK")
</pallas_src>

<mosaic_0001>
module attributes {stable_mosaic.version = 11 : i64} {
  func.func @_classifier_kernel(%arg0: i32, %arg1: memref<2x32xbf16, #tpu.memory_space<vmem>>, %arg2: memref<32x32xbf16, #tpu.memory_space<vmem>>, %arg3: memref<1x32xf32, #tpu.memory_space<vmem>>, %arg4: memref<128x32xbf16, #tpu.memory_space<vmem>>, %arg5: memref<1x128xf32, #tpu.memory_space<vmem>>, %arg6: memref<2x128xf32, #tpu.memory_space<vmem>>, %arg7: memref<2x32xf32, #tpu.memory_space<vmem>>) attributes {dimension_semantics = [#tpu.dimension_semantics<arbitrary>], iteration_bounds = array<i64: 1>, scalar_prefetch = 0 : i64, scratch_operands = 1 : i64, tpu.core_type = #tpu.core_type<tc>, window_params = [{transform_indices = @transform_0, window_bounds = array<i64: 2, 32>}, {transform_indices = @transform_1, window_bounds = array<i64: 32, 32>}, {pipeline_mode = #tpu.pipeline_mode<synchronous>, transform_indices = @transform_2, window_bounds = array<i64: 1, 32>}, {pipeline_mode = #tpu.pipeline_mode<synchronous>, transform_indices = @transform_3, window_bounds = array<i64: 128, 32>}, {pipeline_mode = #tpu.pipeline_mode<synchronous>, transform_indices = @transform_4, window_bounds = array<i64: 1, 128>}, {pipeline_mode = #tpu.pipeline_mode<synchronous>, transform_indices = @transform_5, window_bounds = array<i64: 2, 128>}]} {
    %c0_i32 = arith.constant 0 : i32
    %0 = arith.cmpi eq, %arg0, %c0_i32 : i32
    %1 = arith.extui %0 : i1 to i32
    %c0_i32_0 = arith.constant 0 : i32
    %2 = arith.cmpi ne, %1, %c0_i32_0 : i32
    scf.if %2 {
      %cst_10 = arith.constant 0.000000e+00 : f32
      %12 = vector.broadcast %cst_10 : f32 to vector<2x32xf32>
      %c0_11 = arith.constant 0 : index
      %c0_12 = arith.constant 0 : index
      %13 = vector.load %arg7[%c0_11, %c0_12] : memref<2x32xf32, #tpu.memory_space<vmem>>, vector<2x32xf32>
      tpu.vector_store %arg7[%c0_11, %c0_12], %12 {strides = array<i32>} : memref<2x32xf32, #tpu.memory_space<vmem>>, vector<2x32xf32>,
    } else {
    }
    %c0 = arith.constant 0 : index
    %c0_1 = arith.constant 0 : index
    %3 = vector.load %arg7[%c0, %c0_1] : memref<2x32xf32, #tpu.memory_space<vmem>>, vector<2x32xf32>
    %c0_2 = arith.constant 0 : index
    %c0_3 = arith.constant 0 : index
    %4 = vector.load %arg1[%c0_2, %c0_3] : memref<2x32xbf16, #tpu.memory_space<vmem>>, vector<2x32xbf16>
    %c0_4 = arith.constant 0 : index
    %c0_5 = arith.constant 0 : index
    %5 = vector.load %arg2[%c0_4, %c0_5] : memref<32x32xbf16, #tpu.memory_space<vmem>>, vector<32x32xbf16>
    %cst = arith.constant dense<0.000000e+00> : vector<2x32xf32>
    %6 = tpu.matmul %4, %5, %cst {dimension_numbers = #tpu.dot_dimension_numbers<[1], [1], [0], [0], [0, 0, 1, 0], [], []>} : vector<2x32xbf16>, vector<32x32xbf16>, vector<2x32xf32> -> vector<2x32xf32>
    %7 = arith.addf %3, %6 : vector<2x32xf32>
    %c0_6 = arith.constant 0 : index
    %c0_7 = arith.constant 0 : index
    %8 = vector.load %arg7[%c0_6, %c0_7] : memref<2x32xf32, #tpu.memory_space<vmem>>, vector<2x32xf32>
    tpu.vector_store %arg7[%c0_6, %c0_7], %7 {strides = array<i32>} : memref<2x32xf32, #tpu.memory_space<vmem>>, vector<2x32xf32>,
    %c0_i32_8 = arith.constant 0 : i32
    %9 = arith.cmpi eq, %arg0, %c0_i32_8 : i32
    %10 = arith.extui %9 : i1 to i32
    %c0_i32_9 = arith.constant 0 : i32
    %11 = arith.cmpi ne, %10, %c0_i32_9 : i32
    scf.if %11 {
      %c0_10 = arith.constant 0 : index
      %c0_11 = arith.constant 0 : index
      %12 = vector.load %arg7[%c0_10, %c0_11] : memref<2x32xf32, #tpu.memory_space<vmem>>, vector<2x32xf32>
      %c0_12 = arith.constant 0 : index
      %c0_13 = arith.constant 0 : index
      %13 = vector.load %arg3[%c0_12, %c0_13] : memref<1x32xf32, #tpu.memory_space<vmem>>, vector<1x32xf32>
      %14 = vector.broadcast %13 : vector<1x32xf32> to vector<2x32xf32>
      %15 = arith.addf %12, %14 : vector<2x32xf32>
      %16 = math.tanh %15 : vector<2x32xf32>
      %17 = arith.truncf %16 : vector<2x32xf32> to vector<2x32xbf16>
      %c0_14 = arith.constant 0 : index
      %c0_15 = arith.constant 0 : index
      %18 = vector.load %arg4[%c0_14, %c0_15] : memref<128x32xbf16, #tpu.memory_space<vmem>>, vector<128x32xbf16>
      %cst_16 = arith.constant dense<0.000000e+00> : vector<2x128xf32>
      %19 = tpu.matmul %17, %18, %cst_16 {dimension_numbers = #tpu.dot_dimension_numbers<[1], [1], [0], [0], [0, 0, 1, 0], [], []>} : vector<2x32xbf16>, vector<128x32xbf16>, vector<2x128xf32> -> vector<2x128xf32>
      %c0_17 = arith.constant 0 : index
      %c0_18 = arith.constant 0 : index
      %20 = vector.load %arg5[%c0_17, %c0_18] : memref<1x128xf32, #tpu.memory_space<vmem>>, vector<1x128xf32>
      %21 = vector.broadcast %20 : vector<1x128xf32> to vector<2x128xf32>
      %22 = arith.addf %19, %21 : vector<2x128xf32>
      %c0_19 = arith.constant 0 : index
      %c0_20 = arith.constant 0 : index
      %23 = vector.load %arg6[%c0_19, %c0_20] : memref<2x128xf32, #tpu.memory_space<vmem>>, vector<2x128xf32>
      tpu.vector_store %arg6[%c0_19, %c0_20], %22 {strides = array<i32>} : memref<2x128xf32, #tpu.memory_space<vmem>>, vector<2x128xf32>,
    } else {
    }
    return
  }
  func.func @transform_0(%arg0: i32) -> (i32, i32) {
    %c0_i32 = arith.constant 0 : i32
    %c0_i32_0 = arith.constant 0 : i32
    return %c0_i32, %arg0 : i32, i32
  }
  func.func @transform_1(%arg0: i32) -> (i32, i32) {
    %c0_i32 = arith.constant 0 : i32
    %c0_i32_0 = arith.constant 0 : i32
    return %c0_i32, %arg0 : i32, i32
  }
  func.func @transform_2(%arg0: i32) -> (i32, i32) {
    %c0_i32 = arith.constant 0 : i32
    %c0_i32_0 = arith.constant 0 : i32
    %c0_i32_1 = arith.constant 0 : i32
    return %c0_i32, %c0_i32_0 : i32, i32
  }
  func.func @transform_3(%arg0: i32) -> (i32, i32) {
    %c0_i32 = arith.constant 0 : i32
    %c0_i32_0 = arith.constant 0 : i32
    %c0_i32_1 = arith.constant 0 : i32
    return %c0_i32, %c0_i32_0 : i32, i32
  }
  func.func @transform_4(%arg0: i32) -> (i32, i32) {
    %c0_i32 = arith.constant 0 : i32
    %c0_i32_0 = arith.constant 0 : i32
    %c0_i32_1 = arith.constant 0 : i32
    return %c0_i32, %c0_i32_0 : i32, i32
  }
  func.func @transform_5(%arg0: i32) -> (i32, i32) {
    %c0_i32 = arith.constant 0 : i32
    %c0_i32_0 = arith.constant 0 : i32
    %c0_i32_1 = arith.constant 0 : i32
    return %c0_i32, %c0_i32_0 : i32, i32
  }
}

</mosaic_0001>

<bundles_post_ra>
// kernel: tpu_custom_call.1
= control target key start
LH: loop header
LB: loop body
LE: loop exit
PB: predicated region body
PF: predicated region fallthrough
CT: control target
= control target key end

     0   :  { %v349_v1 = vmov 0.0   ;;  %vm44_vm0 = vcmask 261120   ;;  %vm350_vm1 = vmmov 0   ;;  %vm26_vm2 = vcmask 254976   ;;  %s447_s0 = inlined_call_operand.vmem [shape: bf16[2,32], index: 0, kind: input, shape index: {}]   ;;  %s448_s1 = inlined_call_operand.vmem [shape: bf16[32,32], index: 1, kind: input, shape index: {}]   ;;  %s449_s2 = inlined_call_operand.vmem [shape: f32[1,32], index: 2, kind: input, shape index: {}]   ;;  %s450_s3 = inlined_call_operand.vmem [shape: bf16[128,32], index: 3, kind: input, shape index: {}]   ;;  %s451_s4 = inlined_call_operand.vmem [shape: f32[1,128], index: 4, kind: input, shape index: {}]   ;;  %s452_s5 = inlined_call_operand.hbm [shape: f32[2,128], index: 5, kind: output, shape index: {}]  }
   0x1   :  { %v313_v0 = vld [vmem:[%s448_s1] sm:$0xff]   ;;  %282 = vmatprep.subr.bf16.mxu0 %v349_v1  ;;  %290 = vmatprep.subr.bf16.mxu1 %v349_v1  ;;  %v314_v4 = vld [vmem:[%s448_s1 + $0x8] sm:$0xff]   ;;  %27 = vst.msk [vmem:[#allocation2] sm:$0x3] %vm26_vm2, %v349_v1 }
   0x2   :  { %v49_v2 = vsel %vm44_vm0, %v313_v0, 0  ;;  %286 = vmatprep.mubr.msk.bf16.mxu0 %vm350_vm1, %v349_v1  ;;  %v315_v3 = vld [vmem:[%s450_s3] sm:$0xff]   ;;  %306 = vmatprep.mubr.msk.bf16.mxu1 %vm350_vm1, %v349_v1  ;;  %v316_v6 = vld [vmem:[%s450_s3 + $0x8] sm:$0xff]   ;;  %v52_v7 = vsel %vm44_vm0, %v314_v4, 0 }
   0x3   :  { %283 = vmatpush3.bf16.xpose.msra.mxu0 %v49_v2  ;;  %v178_v5 = vsel %vm44_vm0, %v315_v3, 0 }
   0x4   :  { %284 = vmatprep.subr.bf16.mxu0 %v349_v1  ;;  %291 = vmatpush3.bf16.xpose.msra.mxu1 %v178_v5 }
   0x5   :  { %292 = vmatprep.subr.bf16.mxu1 %v349_v1 }
   0x6   :  { %10 = vsyncpa [#allocation4], 0  ;;  %v181_v8 = vsel %vm44_vm0, %v316_v6, 0  ;;  %v29_v9 = vld [vmem:[%s447_s0] sm:$0x1]  ;;  %v317_v10 = vld [vmem:[%s450_s3 + $0x10] sm:$0xff]  }
   0x7   :  { %v184_v11 = vsel %vm44_vm0, %v317_v10, 0  ;;  %v318_v12 = vld [vmem:[%s450_s3 + $0x18] sm:$0xff]   ;;  %v319_v14 = vld [vmem:[%s450_s3 + $0x20] sm:$0xff]   ;;  %v320_v16 = vld [vmem:[%s450_s3 + $0x28] sm:$0xff]   ;;  %s351_s16 = smov [#allocation3]  }
   0x8   :  { %v187_v13 = vsel %vm44_vm0, %v318_v12, 0  ;;  %v190_v15 = vsel %vm44_vm0, %v319_v14, 0  ;;  %v193_v17 = vsel %vm44_vm0, %v320_v16, 0  ;;  %v321_v18 = vld [vmem:[%s450_s3 + $0x30] sm:$0xff]   ;;  %v322_v20 = vld [vmem:[%s450_s3 + $0x38] sm:$0xff]   ;;  %s248_s17 = sshll.u32 %s351_s16, 4  ;;  %s249_s17 = int_to_ptr.vmem [resolvable:$true] %s248_s17 }
   0x9   :  { %v196_v19 = vsel %vm44_vm0, %v321_v18, 0  ;;  %v199_v21 = vsel %vm44_vm0, %v322_v20, 0  ;;  %v28_v22 = vld [vmem:[#allocation2] sm:$0x3]  ;;  %p330_p1 = scmp.lt.s32.totalorder %s249_s17, %s249_s17 }
   0xa   :  { %v259_v28 = vld [vmem:[%s449_s2] ss:$0 sm:$0xff]  ;;  %s325_s2 = scalar_lea.vmem %s249_s17, 32 }
   0xb   :  { %285 = vmatpush3.bf16.xpose.msra.mxu0 %v52_v7  ;;  %v260_v33 = vld [vmem:[%s451_s4] ss:$0 sm:$0xff]  ;;  %p326_p0 = scmp.ne.s32.totalorder %s249_s17, %s325_s2  ;;  %p331_p2 = scmp.lt.s32.totalorder %s325_s2, %s325_s2 }
   0xc   :  { %293 = vmatpush3.bf16.xpose.msra.mxu1 %v181_v8 }
   0xd   :  { %294 = vmatprep.subr.bf16.mxu1 %v349_v1  ;;  %p332_p3 = por %p331_p2, %p330_p1 }
   0xf   :  { %p333_p4 = pnand %p332_p3, %p326_p0 }
  0x12   :  { %287 = vmatmul.mubr.msk.bf16.vlgmr.msra.gmra.mrb[0].mxu0 %vm44_vm0, %v29_v9 }
  0x14   :  { %295 = vmatpush3.bf16.xpose.msra.mxu1 %v184_v11 }
  0x15   :  { %296 = vmatprep.subr.bf16.mxu1 %v349_v1 }
  0x1c   :  { %297 = vmatpush3.bf16.xpose.msra.mxu1 %v187_v13 }
  0x1d   :  { %298 = vmatprep.subr.bf16.mxu1 %v349_v1 }
  0x24   :  { %299 = vmatpush3.bf16.xpose.msra.mxu1 %v190_v15 }
  0x25   :  { %300 = vmatprep.subr.bf16.mxu1 %v349_v1 }
  0x2c   :  { %301 = vmatpush3.bf16.xpose.msra.mxu1 %v193_v17 }
  0x2d   :  { %302 = vmatprep.subr.bf16.mxu1 %v349_v1 }
  0x34   :  { %303 = vmatpush3.bf16.xpose.msra.mxu1 %v196_v19 }
  0x35   :  { %304 = vmatprep.subr.bf16.mxu1 %v349_v1 }
  0x3c   :  { %305 = vmatpush3.bf16.xpose.msra.mxu1 %v199_v21 }
  0xe5   :  { %v88_v23 = vpop.f32.mrb[0].mxu0 }
  0xe6   :  { %v94_v24 = vadd.f32 %v88_v23, %v28_v22  ;;  %v288_v25 = vpop.f32.mrb[1].mxu0 }
  0xe7   :  { %v91_v26 = vpop.f32.mrb[2].mxu0 }
  0xe8   :  { %96 = vst.msk [vmem:[#allocation2] sm:$0x3] %vm26_vm2, %v94_v24  ;;  %v289_v27 = vpop.f32.mrb[3].mxu0 }
  0xef   :  { %v100_v29 = vld [vmem:[#allocation2] sm:$0x3] }
  0xf0   :  { %v108_v30 = vadd.f32 %v259_v28, %v100_v29 }
  0xf2   :  { %323 = vtanh.f32 %v108_v30 }
  0xfc   :  { %v324_v31 = vpop.eup %323 }
  0xfd   :  { %v110_v32 = vpack.c.bf16 %v324_v31, %v324_v31 }
  0xff   :  { %307 = vmatmul.mubr.msk.bf16.vlgmr.msra.gmra.mrb[0].mxu1 %vm44_vm0, %v110_v32 }
 0x1d2   :  { %v235_v34 = vpop.f32.mrb[0].mxu1 }
 0x1d3   :  { %v236_v35 = vadd.f32 %v260_v33, %v235_v34  ;;  %v308_v36 = vpop.f32.mrb[1].mxu1 }
 0x1d4   :  { %v238_v37 = vpop.f32.mrb[2].mxu1 }
 0x1d5   :  { %241 = vst [vmem:[#allocation3] sm:$0x3] %v236_v35  ;;  %v309_v38 = vpop.f32.mrb[3].mxu1 }
 0x1d6   :  { %336 = shalt.err (!%p333_p4)
}
 0x1d7   :  { %s337_s4 = scalar_lea.hbm %s452_s5, 32 }
 0x1d8   :  { %p338_p5 = scmp.ne.s32.totalorder %s452_s5, %s337_s4  ;;  %p341_p6 = scmp.lt.u32.totalorder %s337_s4, %s452_s5 }
 0x1da   :  { %p343_p7 = pnand %p341_p6, %p338_p5 }
 0x1dc   :  { %346 = shalt.err (!%p343_p7)
}
 0x1dd   :  { %251 = dma.vmem_to_hbm [thread:$0]  %s249_s17, 32, %s452_s5, [#allocation4]  }
 0x1de   :  { %347 = dma.done.wait [#allocation4], 32  }
 0x1df   :  { %348 = vsyncadd [#allocation4], 4294967264 }
 0x1e0   :  { %255 = vsyncpa [#allocation4], 1 }

</bundles_post_ra>
